<compile_context>
chip_gen: v7x
topology: tpu7x:2x2x1
jax: 0.10.0
libtpu: 0.0.40
codegen_flags: <defaults>
</compile_context>

<pallas_src>
import jax
import jax.numpy as jnp
from jax import lax
from jax.experimental import pallas as pl
from jax.experimental.pallas import tpu as pltpu

COMMITMENT_COST = 0.25
TIME_TILE_TARGET = 512


def _time_tiling(T, target=TIME_TILE_TARGET):
    """Return (time_tile, num_time_tiles, padded_T)."""
    if T <= target:
        return T, 1, T
    n_t = -(-T // target)
    return target, n_t, n_t * target


def _conv1d_k3(x, w_ref, b_ref):
    """'same' Conv1d, K=3, channels-last, as a single K=3*Cin MXU dot.

    x: (T, Cin) f32.  w_ref: (3*Cin, Cout) bf16 (rows = [tap t-1; tap t; tap t+1]).
    b_ref: (1, Cout) f32.  Accumulation in f32; bias add in f32.
    """
    Tn = x.shape[0]
    row = lax.broadcasted_iota(jnp.int32, x.shape, 0)
    prev = jnp.where(row >= 1, pltpu.roll(x, shift=1, axis=0), 0.0)           # x[t-1]
    nxt = jnp.where(row <= Tn - 2, pltpu.roll(x, shift=Tn - 1, axis=0), 0.0)  # x[t+1]
    xcat = jnp.concatenate([prev, x, nxt], axis=-1).astype(jnp.bfloat16)      # (T, 3*Cin)
    y = jnp.dot(xcat, w_ref[...], preferred_element_type=jnp.float32)
    return y + b_ref[...]


def _make_fused_kernel(T, TQ, T_pad, n_t, D, M):
    ragged = (T_pad != T)

    def kernel(x_ref, emb_ref, embT2_ref, esq_ref,
               w1_ref, b1_ref, w2_ref, b2_ref,
               out_ref, sq_ref, cnt_ref,
               zq_scr, res_scr):
        t = pl.program_id(1)

        @pl.when(t == 0)
        def _init():
            sq_ref[...] = jnp.zeros_like(sq_ref)
            cnt_ref[...] = jnp.zeros_like(cnt_ref)
            res_scr[...] = jnp.zeros_like(res_scr)

        # ------------------------ VQ on this time tile ----------------------
        x = x_ref[0]                                           # (TQ, D) f32
        # score = ||e||^2 - 2 x.e  (||x||^2 dropped, argmin-invariant);
        # the -2 is folded into embT2 on the host; bf16 MXU operands.
        score = esq_ref[...] + jnp.dot(x.astype(jnp.bfloat16), embT2_ref[...],
                                       preferred_element_type=jnp.float32)  # (TQ, M)

        # first-minimum argmin via iota (matches torch.argmin tie-break)
        iota = lax.broadcasted_iota(jnp.int32, (TQ, M), 1)
        min_s = jnp.min(score, axis=-1, keepdims=True)
        first_idx = jnp.min(jnp.where(score <= min_s, iota, M),
                            axis=-1, keepdims=True)
        enc = (iota == first_idx).astype(jnp.float32)          # one-hot (TQ, M)

        # quantized = one_hot @ codebook (bf16 MXU, f32 accumulate);
        # straight-through output == quantized numerically.
        quant = jnp.dot(enc.astype(jnp.bfloat16), emb_ref[...],
                        preferred_element_type=jnp.float32)    # (TQ, D)
        diff = x - quant

        if ragged:   # mask padded tail rows out of the statistics
            rowi = lax.broadcasted_iota(jnp.int32, (TQ, 1), 0) + t * TQ
            valid = (rowi < T).astype(jnp.float32)
            diff = diff * valid
            enc = enc * valid

        # Stash the quantized tile in the per-batch VMEM scratch (bf16):
        # z_quan never goes to HBM.
        if n_t == 1:
            zq_scr[...] = quant.astype(zq_scr.dtype)
        else:
            start = pl.multiple_of(t * TQ, TQ)
            zq_scr[pl.ds(start, TQ), :] = quant.astype(zq_scr.dtype)

        res_scr[...] += jnp.sum(diff, axis=0, keepdims=True)        # (1, D)
        sq_ref[0] += jnp.sum(diff * diff, axis=0, keepdims=True)    # (1, D)
        cnt_ref[0] += jnp.sum(enc, axis=0, keepdims=True)           # (1, M)

        # ------------------- decoder at the last time tile ------------------
        @pl.when(t == n_t - 1)
        def _decode():
            # speaker_emb = mean over time of (c - z_quan)
            spk = res_scr[...] * (1.0 / T)                     # (1, D)
            xdec = zq_scr[...].astype(jnp.float32) + spk       # (T_pad, D)
            if ragged:
                rows = lax.broadcasted_iota(jnp.int32, (T_pad, 1), 0)
                vmask = (rows < T).astype(jnp.float32)
                xdec = xdec * vmask
            h = jnp.maximum(_conv1d_k3(xdec, w1_ref, b1_ref), 0.0)   # (T_pad, H)
            if ragged:
                h = h * vmask              # preserve zero 'same'-padding semantics
            y = _conv1d_k3(h, w2_ref, b2_ref)                        # (T_pad, n_mels)
            out_ref[0] = y.astype(out_ref.dtype)

    return kernel


@jax.jit
def vqvc_forward(mels, emb, w1, b1, w2, b2):
    N, T, D = mels.shape
    M = emb.shape[0]
    H = w1.shape[-1]
    n_mels = w2.shape[-1]

    TQ, n_t, T_pad = _time_tiling(T)
    mels_in = mels if T_pad == T else jnp.pad(mels, ((0, 0), (0, T_pad - T), (0, 0)))

    # One-off host parameter prep: bf16 codebook, -2*codebook^T, squared norms
    # (f32), and conv weights flattened to (3*Cin, Cout) bf16 for single-dot convs.
    emb_bf = emb.astype(jnp.bfloat16)
    embT2 = (-2.0 * emb.T).astype(jnp.bfloat16)
    esq = jnp.sum(emb * emb, axis=-1)[None, :]                  # (1, M) f32
    w1f = w1.reshape(3 * D, H).astype(jnp.bfloat16)
    w2f = w2.reshape(3 * H, n_mels).astype(jnp.bfloat16)

    kernel = _make_fused_kernel(T, TQ, T_pad, n_t, D, M)

    mels_hat_p, sq_sum, cnt_sum = pl.pallas_call(
        kernel,
        grid=(N, n_t),
        in_specs=[
            pl.BlockSpec((1, TQ, D), lambda n, t: (n, t, 0)),    # mels tile (pipelined)
            pl.BlockSpec((M, D), lambda n, t: (0, 0)),           # codebook (bf16, resident)
            pl.BlockSpec((D, M), lambda n, t: (0, 0)),           # -2*codebook^T (resident)
            pl.BlockSpec((1, M), lambda n, t: (0, 0)),           # ||e||^2 (resident)
            pl.BlockSpec((3 * D, H), lambda n, t: (0, 0)),       # conv1 weight (resident)
            pl.BlockSpec((1, H), lambda n, t: (0, 0)),           # conv1 bias
            pl.BlockSpec((3 * H, n_mels), lambda n, t: (0, 0)),  # conv2 weight (resident)
            pl.BlockSpec((1, n_mels), lambda n, t: (0, 0)),      # conv2 bias
        ],
        out_specs=(
            pl.BlockSpec((1, T_pad, n_mels), lambda n, t: (n, 0, 0)),  # mels_hat (per batch)
            pl.BlockSpec((1, 1, D), lambda n, t: (n, 0, 0)),     # sum (x - q)^2 per lane
            pl.BlockSpec((1, 1, M), lambda n, t: (n, 0, 0)),     # code counts
        ),
        out_shape=(
            jax.ShapeDtypeStruct((N, T_pad, n_mels), jnp.float32),
            jax.ShapeDtypeStruct((N, 1, D), jnp.float32),
            jax.ShapeDtypeStruct((N, 1, M), jnp.float32),
        ),
        scratch_shapes=[
            pltpu.VMEM((T_pad, D), jnp.bfloat16),   # per-batch z_quan (never hits HBM)
            pltpu.VMEM((1, D), jnp.float32),        # per-batch sum_t (c - z_quan)
        ],
        compiler_params=pltpu.CompilerParams(
            dimension_semantics=("parallel", "arbitrary"),
            vmem_limit_bytes=48 * 1024 * 1024),
    )(mels_in, emb_bf, embT2, esq, w1f, b1, w2f, b2)

    # scalar finalization on tiny partials (outside the kernel)
    loss = (COMMITMENT_COST * jnp.sum(sq_sum) / (N * T * D)).reshape(1)
    avg_probs = jnp.sum(cnt_sum, axis=(0, 1)) / (N * T)
    perplexity = jnp.exp(-jnp.sum(avg_probs * jnp.log(avg_probs + 1e-10))).reshape(1)

    mels_hat = mels_hat_p if T_pad == T else mels_hat_p[:, :T]
    return mels_hat, loss, perplexity


if __name__ == "__main__":
    # Small shapes consistent with forward(): mels (N, T, z_dim), codebook
    # (M, z_dim), decoder z_dim -> n_mels.
    N, T = 2, 16
    Z_DIM = 128          # args.z_dim (channel dim of c / codebook)
    N_EMB = 128          # args.n_embeddings
    N_MELS = 80          # args.n_mels
    HID = Z_DIM          # decoder hidden width

    key = jax.random.PRNGKey(0)
    k_mel, k_emb, k_w1, k_b1, k_w2, k_b2 = jax.random.split(key, 6)

    mels = jax.random.normal(k_mel, (N, T, Z_DIM), dtype=jnp.float32)
    init_bound = 1.0 / N_EMB
    emb = jax.random.uniform(k_emb, (N_EMB, Z_DIM), jnp.float32,
                             -init_bound, init_bound)
    # conv weights stored as (K, Cin, Cout), biases (1, Cout)
    bnd1 = 1.0 / (Z_DIM * 3) ** 0.5
    w1 = jax.random.uniform(k_w1, (3, Z_DIM, HID), jnp.float32, -bnd1, bnd1)
    b1 = jax.random.uniform(k_b1, (1, HID), jnp.float32, -bnd1, bnd1)
    bnd2 = 1.0 / (HID * 3) ** 0.5
    w2 = jax.random.uniform(k_w2, (3, HID, N_MELS), jnp.float32, -bnd2, bnd2)
    b2 = jax.random.uniform(k_b2, (1, N_MELS), jnp.float32, -bnd2, bnd2)

    mels_hat, loss, ppl = vqvc_forward(mels, emb, w1, b1, w2, b2)
    jax.block_until_ready((mels_hat, loss, ppl))

    assert mels_hat.shape == (N, T, N_MELS)
    assert loss.shape == (1,) and ppl.shape == (1,)
    assert bool(jnp.isfinite(loss)[0]) and bool(jnp.isfinite(ppl)[0])
    assert bool(jnp.all(jnp.isfinite(mels_hat)))
    print("KERNEL_OK")
</pallas_src>

<mosaic_0001>
module attributes {stable_mosaic.version = 11 : i64} {
  func.func @kernel(%arg0: i32, %arg1: i32, %arg2: memref<1x16x128xf32, #tpu.memory_space<vmem>>, %arg3: memref<128x128xbf16, #tpu.memory_space<vmem>>, %arg4: memref<128x128xbf16, #tpu.memory_space<vmem>>, %arg5: memref<1x128xf32, #tpu.memory_space<vmem>>, %arg6: memref<384x128xbf16, #tpu.memory_space<vmem>>, %arg7: memref<1x128xf32, #tpu.memory_space<vmem>>, %arg8: memref<384x80xbf16, #tpu.memory_space<vmem>>, %arg9: memref<1x80xf32, #tpu.memory_space<vmem>>, %arg10: memref<1x16x80xf32, #tpu.memory_space<vmem>>, %arg11: memref<1x1x128xf32, #tpu.memory_space<vmem>>, %arg12: memref<1x1x128xf32, #tpu.memory_space<vmem>>, %arg13: memref<16x128xbf16, #tpu.memory_space<vmem>>, %arg14: memref<1x128xf32, #tpu.memory_space<vmem>>) attributes {dimension_semantics = [#tpu.dimension_semantics<parallel>, #tpu.dimension_semantics<arbitrary>], iteration_bounds = array<i64: 2, 1>, scalar_prefetch = 0 : i64, scratch_operands = 2 : i64, tpu.core_type = #tpu.core_type<tc>, window_params = [{transform_indices = @transform_0, window_bounds = array<i64: 1, 16, 128>}, {pipeline_mode = #tpu.pipeline_mode<synchronous>, transform_indices = @transform_1, window_bounds = array<i64: 128, 128>}, {pipeline_mode = #tpu.pipeline_mode<synchronous>, transform_indices = @transform_2, window_bounds = array<i64: 128, 128>}, {pipeline_mode = #tpu.pipeline_mode<synchronous>, transform_indices = @transform_3, window_bounds = array<i64: 1, 128>}, {pipeline_mode = #tpu.pipeline_mode<synchronous>, transform_indices = @transform_4, window_bounds = array<i64: 384, 128>}, {pipeline_mode = #tpu.pipeline_mode<synchronous>, transform_indices = @transform_5, window_bounds = array<i64: 1, 128>}, {pipeline_mode = #tpu.pipeline_mode<synchronous>, transform_indices = @transform_6, window_bounds = array<i64: 384, 80>}, {pipeline_mode = #tpu.pipeline_mode<synchronous>, transform_indices = @transform_7, window_bounds = array<i64: 1, 80>}, {transform_indices = @transform_8, window_bounds = array<i64: 1, 16, 80>}, {transform_indices = @transform_9, window_bounds = array<i64: 1, 1, 128>}, {transform_indices = @transform_10, window_bounds = array<i64: 1, 1, 128>}]} {
    %c0_i32 = arith.constant 0 : i32
    %0 = arith.cmpi eq, %arg1, %c0_i32 : i32
    %1 = arith.extui %0 : i1 to i32
    %c0_i32_0 = arith.constant 0 : i32
    %2 = arith.cmpi ne, %1, %c0_i32_0 : i32
    scf.if %2 {
      %cst_35 = arith.constant 0.000000e+00 : f32
      %55 = vector.broadcast %cst_35 : f32 to vector<1x1x128xf32>
      %c0_36 = arith.constant 0 : index
      %c0_37 = arith.constant 0 : index
      %c0_38 = arith.constant 0 : index
      %56 = vector.load %arg11[%c0_36, %c0_37, %c0_38] : memref<1x1x128xf32, #tpu.memory_space<vmem>>, vector<1x1x128xf32>
      tpu.vector_store %arg11[%c0_36, %c0_37, %c0_38], %55 {strides = array<i32>} : memref<1x1x128xf32, #tpu.memory_space<vmem>>, vector<1x1x128xf32>,
      %cst_39 = arith.constant 0.000000e+00 : f32
      %57 = vector.broadcast %cst_39 : f32 to vector<1x1x128xf32>
      %c0_40 = arith.constant 0 : index
      %c0_41 = arith.constant 0 : index
      %c0_42 = arith.constant 0 : index
      %58 = vector.load %arg12[%c0_40, %c0_41, %c0_42] : memref<1x1x128xf32, #tpu.memory_space<vmem>>, vector<1x1x128xf32>
      tpu.vector_store %arg12[%c0_40, %c0_41, %c0_42], %57 {strides = array<i32>} : memref<1x1x128xf32, #tpu.memory_space<vmem>>, vector<1x1x128xf32>,
      %cst_43 = arith.constant 0.000000e+00 : f32
      %59 = vector.broadcast %cst_43 : f32 to vector<1x128xf32>
      %c0_44 = arith.constant 0 : index
      %c0_45 = arith.constant 0 : index
      %60 = vector.load %arg14[%c0_44, %c0_45] : memref<1x128xf32, #tpu.memory_space<vmem>>, vector<1x128xf32>
      tpu.vector_store %arg14[%c0_44, %c0_45], %59 {strides = array<i32>} : memref<1x128xf32, #tpu.memory_space<vmem>>, vector<1x128xf32>,
    } else {
    }
    %c0 = arith.constant 0 : index
    %c0_1 = arith.constant 0 : index
    %c0_2 = arith.constant 0 : index
    %3 = vector.load %arg2[%c0, %c0_1, %c0_2] : memref<1x16x128xf32, #tpu.memory_space<vmem>>, vector<1x16x128xf32>
    %4 = vector.shape_cast %3 : vector<1x16x128xf32> to vector<16x128xf32>
    %c0_3 = arith.constant 0 : index
    %c0_4 = arith.constant 0 : index
    %5 = vector.load %arg5[%c0_3, %c0_4] : memref<1x128xf32, #tpu.memory_space<vmem>>, vector<1x128xf32>
    %6 = arith.truncf %4 : vector<16x128xf32> to vector<16x128xbf16>
    %c0_5 = arith.constant 0 : index
    %c0_6 = arith.constant 0 : index
    %7 = vector.load %arg4[%c0_5, %c0_6] : memref<128x128xbf16, #tpu.memory_space<vmem>>, vector<128x128xbf16>
    %cst = arith.constant dense<0.000000e+00> : vector<16x128xf32>
    %8 = tpu.matmul %6, %7, %cst {dimension_numbers = #tpu.dot_dimension_numbers<[1], [0], [0], [1], [0, 0, 1, 1], [], []>} : vector<16x128xbf16>, vector<128x128xbf16>, vector<16x128xf32> -> vector<16x128xf32>
    %9 = vector.broadcast %5 : vector<1x128xf32> to vector<16x128xf32>
    %10 = arith.addf %9, %8 : vector<16x128xf32>
    %11 = tpu.iota {dimensions = array<i32: 1>} : vector<16x128xi32>
    %cst_7 = arith.constant dense<0x7F800000> : vector<16xf32>
    %12 = vector.multi_reduction <minimumf>, %10, %cst_7 [1] : vector<16x128xf32> to vector<16xf32>
    %13 = vector.shape_cast %12 : vector<16xf32> to vector<16x1xf32>
    %14 = vector.broadcast %13 : vector<16x1xf32> to vector<16x128xf32>
    %15 = arith.cmpf ole, %10, %14 : vector<16x128xf32>
    %c128_i32 = arith.constant 128 : i32
    %16 = vector.broadcast %c128_i32 : i32 to vector<16x128xi32>
    %17 = arith.select %15, %11, %16 : vector<16x128xi1>, vector<16x128xi32>
    %cst_8 = arith.constant dense<2147483647> : vector<16xi32>
    %18 = vector.multi_reduction <minsi>, %17, %cst_8 [1] : vector<16x128xi32> to vector<16xi32>
    %19 = vector.shape_cast %18 : vector<16xi32> to vector<16x1xi32>
    %20 = vector.broadcast %19 : vector<16x1xi32> to vector<16x128xi32>
    %21 = arith.cmpi eq, %11, %20 : vector<16x128xi32>
    %22 = arith.extui %21 : vector<16x128xi1> to vector<16x128xi32>
    %23 = arith.sitofp %22 : vector<16x128xi32> to vector<16x128xf32>
    %24 = arith.truncf %23 : vector<16x128xf32> to vector<16x128xbf16>
    %c0_9 = arith.constant 0 : index
    %c0_10 = arith.constant 0 : index
    %25 = vector.load %arg3[%c0_9, %c0_10] : memref<128x128xbf16, #tpu.memory_space<vmem>>, vector<128x128xbf16>
    %cst_11 = arith.constant dense<0.000000e+00> : vector<16x128xf32>
    %26 = tpu.matmul %24, %25, %cst_11 {dimension_numbers = #tpu.dot_dimension_numbers<[1], [0], [0], [1], [0, 0, 1, 1], [], []>} : vector<16x128xbf16>, vector<128x128xbf16>, vector<16x128xf32> -> vector<16x128xf32>
    %27 = arith.subf %4, %26 : vector<16x128xf32>
    %28 = arith.truncf %26 : vector<16x128xf32> to vector<16x128xbf16>
    %c0_12 = arith.constant 0 : index
    %c0_13 = arith.constant 0 : index
    %29 = vector.load %arg13[%c0_12, %c0_13] : memref<16x128xbf16, #tpu.memory_space<vmem>>, vector<16x128xbf16>
    tpu.vector_store %arg13[%c0_12, %c0_13], %28 {strides = array<i32>} : memref<16x128xbf16, #tpu.memory_space<vmem>>, vector<16x128xbf16>,
    %c0_14 = arith.constant 0 : index
    %c0_15 = arith.constant 0 : index
    %30 = vector.load %arg14[%c0_14, %c0_15] : memref<1x128xf32, #tpu.memory_space<vmem>>, vector<1x128xf32>
    %cst_16 = arith.constant dense<0.000000e+00> : vector<128xf32>
    %31 = vector.multi_reduction <add>, %27, %cst_16 [0] : vector<16x128xf32> to vector<128xf32>
    %32 = vector.shape_cast %31 : vector<128xf32> to vector<1x128xf32>
    %33 = arith.addf %30, %32 : vector<1x128xf32>
    %c0_17 = arith.constant 0 : index
    %c0_18 = arith.constant 0 : index
    %34 = vector.load %arg14[%c0_17, %c0_18] : memref<1x128xf32, #tpu.memory_space<vmem>>, vector<1x128xf32>
    tpu.vector_store %arg14[%c0_17, %c0_18], %33 {strides = array<i32>} : memref<1x128xf32, #tpu.memory_space<vmem>>, vector<1x128xf32>,
    %c0_19 = arith.constant 0 : index
    %c0_20 = arith.constant 0 : index
    %c0_21 = arith.constant 0 : index
    %35 = vector.load %arg11[%c0_19, %c0_20, %c0_21] : memref<1x1x128xf32, #tpu.memory_space<vmem>>, vector<1x1x128xf32>
    %36 = vector.shape_cast %35 : vector<1x1x128xf32> to vector<1x128xf32>
    %37 = arith.mulf %27, %27 : vector<16x128xf32>
    %cst_22 = arith.constant dense<0.000000e+00> : vector<128xf32>
    %38 = vector.multi_reduction <add>, %37, %cst_22 [0] : vector<16x128xf32> to vector<128xf32>
    %39 = vector.shape_cast %38 : vector<128xf32> to vector<1x128xf32>
    %40 = arith.addf %36, %39 : vector<1x128xf32>
    %c0_23 = arith.constant 0 : index
    %c0_24 = arith.constant 0 : index
    %c0_25 = arith.constant 0 : index
    %41 = vector.load %arg11[%c0_23, %c0_24, %c0_25] : memref<1x1x128xf32, #tpu.memory_space<vmem>>, vector<1x1x128xf32>
    %42 = vector.shape_cast %41 : vector<1x1x128xf32> to vector<1x128xf32>
    %43 = vector.shape_cast %40 : vector<1x128xf32> to vector<1x1x128xf32>
    tpu.vector_store %arg11[%c0_23, %c0_24, %c0_25], %43 {strides = array<i32>} : memref<1x1x128xf32, #tpu.memory_space<vmem>>, vector<1x1x128xf32>,
    %c0_26 = arith.constant 0 : index
    %c0_27 = arith.constant 0 : index
    %c0_28 = arith.constant 0 : index
    %44 = vector.load %arg12[%c0_26, %c0_27, %c0_28] : memref<1x1x128xf32, #tpu.memory_space<vmem>>, vector<1x1x128xf32>
    %45 = vector.shape_cast %44 : vector<1x1x128xf32> to vector<1x128xf32>
    %cst_29 = arith.constant dense<0.000000e+00> : vector<128xf32>
    %46 = vector.multi_reduction <add>, %23, %cst_29 [0] : vector<16x128xf32> to vector<128xf32>
    %47 = vector.shape_cast %46 : vector<128xf32> to vector<1x128xf32>
    %48 = arith.addf %45, %47 : vector<1x128xf32>
    %c0_30 = arith.constant 0 : index
    %c0_31 = arith.constant 0 : index
    %c0_32 = arith.constant 0 : index
    %49 = vector.load %arg12[%c0_30, %c0_31, %c0_32] : memref<1x1x128xf32, #tpu.memory_space<vmem>>, vector<1x1x128xf32>
    %50 = vector.shape_cast %49 : vector<1x1x128xf32> to vector<1x128xf32>
    %51 = vector.shape_cast %48 : vector<1x128xf32> to vector<1x1x128xf32>
    tpu.vector_store %arg12[%c0_30, %c0_31, %c0_32], %51 {strides = array<i32>} : memref<1x1x128xf32, #tpu.memory_space<vmem>>, vector<1x1x128xf32>,
    %c0_i32_33 = arith.constant 0 : i32
    %52 = arith.cmpi eq, %arg1, %c0_i32_33 : i32
    %53 = arith.extui %52 : i1 to i32
    %c0_i32_34 = arith.constant 0 : i32
    %54 = arith.cmpi ne, %53, %c0_i32_34 : i32
    scf.if %54 {
      %c0_35 = arith.constant 0 : index
      %c0_36 = arith.constant 0 : index
      %55 = vector.load %arg14[%c0_35, %c0_36] : memref<1x128xf32, #tpu.memory_space<vmem>>, vector<1x128xf32>
      %cst_37 = arith.constant 6.250000e-02 : f32
      %56 = vector.broadcast %cst_37 : f32 to vector<1x128xf32>
      %57 = arith.mulf %55, %56 : vector<1x128xf32>
      %c0_38 = arith.constant 0 : index
      %c0_39 = arith.constant 0 : index
      %58 = vector.load %arg13[%c0_38, %c0_39] : memref<16x128xbf16, #tpu.memory_space<vmem>>, vector<16x128xbf16>
      %59 = arith.extf %58 : vector<16x128xbf16> to vector<16x128xf32>
      %60 = vector.broadcast %57 : vector<1x128xf32> to vector<16x128xf32>
      %61 = arith.addf %59, %60 : vector<16x128xf32>
      %62 = tpu.iota {dimensions = array<i32: 0>} : vector<16x128xi32>
      %c1_i32 = arith.constant 1 : i32
      %63 = vector.broadcast %c1_i32 : i32 to vector<16x128xi32>
      %64 = arith.cmpi sge, %62, %63 : vector<16x128xi32>
      %c1_i32_40 = arith.constant 1 : i32
      %65 = tpu.dynamic_rotate %61 by %c1_i32_40 dim 0 : vector<16x128xf32>, i32 -> vector<16x128xf32>
      %cst_41 = arith.constant 0.000000e+00 : f32
      %66 = vector.broadcast %cst_41 : f32 to vector<16x128xf32>
      %67 = arith.select %64, %65, %66 : vector<16x128xi1>, vector<16x128xf32>
      %c14_i32 = arith.constant 14 : i32
      %68 = vector.broadcast %c14_i32 : i32 to vector<16x128xi32>
      %69 = arith.cmpi sle, %62, %68 : vector<16x128xi32>
      %c15_i32 = arith.constant 15 : i32
      %70 = tpu.dynamic_rotate %61 by %c15_i32 dim 0 : vector<16x128xf32>, i32 -> vector<16x128xf32>
      %cst_42 = arith.constant 0.000000e+00 : f32
      %71 = vector.broadcast %cst_42 : f32 to vector<16x128xf32>
      %72 = arith.select %69, %70, %71 : vector<16x128xi1>, vector<16x128xf32>
      %73 = tpu.concatenate %67, %61, %72 in 1 : vector<16x128xf32>, vector<16x128xf32>, vector<16x128xf32> -> vector<16x384xf32>
      %74 = arith.truncf %73 : vector<16x384xf32> to vector<16x384xbf16>
      %c0_43 = arith.constant 0 : index
      %c0_44 = arith.constant 0 : index
      %75 = vector.load %arg6[%c0_43, %c0_44] : memref<384x128xbf16, #tpu.memory_space<vmem>>, vector<384x128xbf16>
      %cst_45 = arith.constant dense<0.000000e+00> : vector<16x128xf32>
      %76 = tpu.matmul %74, %75, %cst_45 {dimension_numbers = #tpu.dot_dimension_numbers<[1], [0], [0], [1], [0, 0, 1, 1], [], []>} : vector<16x384xbf16>, vector<384x128xbf16>, vector<16x128xf32> -> vector<16x128xf32>
      %c0_46 = arith.constant 0 : index
      %c0_47 = arith.constant 0 : index
      %77 = vector.load %arg7[%c0_46, %c0_47] : memref<1x128xf32, #tpu.memory_space<vmem>>, vector<1x128xf32>
      %78 = vector.broadcast %77 : vector<1x128xf32> to vector<16x128xf32>
      %79 = arith.addf %76, %78 : vector<16x128xf32>
      %cst_48 = arith.constant 0.000000e+00 : f32
      %80 = vector.broadcast %cst_48 : f32 to vector<16x128xf32>
      %81 = arith.maximumf %79, %80 : vector<16x128xf32>
      %82 = tpu.iota {dimensions = array<i32: 0>} : vector<16x128xi32>
      %c1_i32_49 = arith.constant 1 : i32
      %83 = vector.broadcast %c1_i32_49 : i32 to vector<16x128xi32>
      %84 = arith.cmpi sge, %82, %83 : vector<16x128xi32>
      %c1_i32_50 = arith.constant 1 : i32
      %85 = tpu.dynamic_rotate %81 by %c1_i32_50 dim 0 : vector<16x128xf32>, i32 -> vector<16x128xf32>
      %cst_51 = arith.constant 0.000000e+00 : f32
      %86 = vector.broadcast %cst_51 : f32 to vector<16x128xf32>
      %87 = arith.select %84, %85, %86 : vector<16x128xi1>, vector<16x128xf32>
      %c14_i32_52 = arith.constant 14 : i32
      %88 = vector.broadcast %c14_i32_52 : i32 to vector<16x128xi32>
      %89 = arith.cmpi sle, %82, %88 : vector<16x128xi32>
      %c15_i32_53 = arith.constant 15 : i32
      %90 = tpu.dynamic_rotate %81 by %c15_i32_53 dim 0 : vector<16x128xf32>, i32 -> vector<16x128xf32>
      %cst_54 = arith.constant 0.000000e+00 : f32
      %91 = vector.broadcast %cst_54 : f32 to vector<16x128xf32>
      %92 = arith.select %89, %90, %91 : vector<16x128xi1>, vector<16x128xf32>
      %93 = tpu.concatenate %87, %81, %92 in 1 : vector<16x128xf32>, vector<16x128xf32>, vector<16x128xf32> -> vector<16x384xf32>
      %94 = arith.truncf %93 : vector<16x384xf32> to vector<16x384xbf16>
      %c0_55 = arith.constant 0 : index
      %c0_56 = arith.constant 0 : index
      %95 = vector.load %arg8[%c0_55, %c0_56] : memref<384x80xbf16, #tpu.memory_space<vmem>>, vector<384x80xbf16>
      %cst_57 = arith.constant dense<0.000000e+00> : vector<16x80xf32>
      %96 = tpu.matmul %94, %95, %cst_57 {dimension_numbers = #tpu.dot_dimension_numbers<[1], [0], [0], [1], [0, 0, 1, 1], [], []>} : vector<16x384xbf16>, vector<384x80xbf16>, vector<16x80xf32> -> vector<16x80xf32>
      %c0_58 = arith.constant 0 : index
      %c0_59 = arith.constant 0 : index
      %97 = vector.load %arg9[%c0_58, %c0_59] : memref<1x80xf32, #tpu.memory_space<vmem>>, vector<1x80xf32>
      %98 = vector.broadcast %97 : vector<1x80xf32> to vector<16x80xf32>
      %99 = arith.addf %96, %98 : vector<16x80xf32>
      %c0_60 = arith.constant 0 : index
      %c0_61 = arith.constant 0 : index
      %c0_62 = arith.constant 0 : index
      %100 = vector.load %arg10[%c0_60, %c0_61, %c0_62] : memref<1x16x80xf32, #tpu.memory_space<vmem>>, vector<1x16x80xf32>
      %101 = vector.shape_cast %100 : vector<1x16x80xf32> to vector<16x80xf32>
      %102 = vector.shape_cast %99 : vector<16x80xf32> to vector<1x16x80xf32>
      tpu.vector_store %arg10[%c0_60, %c0_61, %c0_62], %102 {strides = array<i32>} : memref<1x16x80xf32, #tpu.memory_space<vmem>>, vector<1x16x80xf32>,
    } else {
    }
    return
  }
  func.func @transform_0(%arg0: i32, %arg1: i32) -> (i32, i32, i32) {
    %c0_i32 = arith.constant 0 : i32
    %c0_i32_0 = arith.constant 0 : i32
    return %arg0, %arg1, %c0_i32 : i32, i32, i32
  }
  func.func @transform_1(%arg0: i32, %arg1: i32) -> (i32, i32) {
    %c0_i32 = arith.constant 0 : i32
    %c0_i32_0 = arith.constant 0 : i32
    %c0_i32_1 = arith.constant 0 : i32
    return %c0_i32, %c0_i32_0 : i32, i32
  }
  func.func @transform_2(%arg0: i32, %arg1: i32) -> (i32, i32) {
    %c0_i32 = arith.constant 0 : i32
    %c0_i32_0 = arith.constant 0 : i32
    %c0_i32_1 = arith.constant 0 : i32
    return %c0_i32, %c0_i32_0 : i32, i32
  }
  func.func @transform_3(%arg0: i32, %arg1: i32) -> (i32, i32) {
    %c0_i32 = arith.constant 0 : i32
    %c0_i32_0 = arith.constant 0 : i32
    %c0_i32_1 = arith.constant 0 : i32
    return %c0_i32, %c0_i32_0 : i32, i32
  }
  func.func @transform_4(%arg0: i32, %arg1: i32) -> (i32, i32) {
    %c0_i32 = arith.constant 0 : i32
    %c0_i32_0 = arith.constant 0 : i32
    %c0_i32_1 = arith.constant 0 : i32
    return %c0_i32, %c0_i32_0 : i32, i32
  }
  func.func @transform_5(%arg0: i32, %arg1: i32) -> (i32, i32) {
    %c0_i32 = arith.constant 0 : i32
    %c0_i32_0 = arith.constant 0 : i32
    %c0_i32_1 = arith.constant 0 : i32
    return %c0_i32, %c0_i32_0 : i32, i32
  }
  func.func @transform_6(%arg0: i32, %arg1: i32) -> (i32, i32) {
    %c0_i32 = arith.constant 0 : i32
    %c0_i32_0 = arith.constant 0 : i32
    %c0_i32_1 = arith.constant 0 : i32
    return %c0_i32, %c0_i32_0 : i32, i32
  }
  func.func @transform_7(%arg0: i32, %arg1: i32) -> (i32, i32) {
    %c0_i32 = arith.constant 0 : i32
    %c0_i32_0 = arith.constant 0 : i32
    %c0_i32_1 = arith.constant 0 : i32
    return %c0_i32, %c0_i32_0 : i32, i32
  }
  func.func @transform_8(%arg0: i32, %arg1: i32) -> (i32, i32, i32) {
    %c0_i32 = arith.constant 0 : i32
    %c0_i32_0 = arith.constant 0 : i32
    %c0_i32_1 = arith.constant 0 : i32
    return %arg0, %c0_i32, %c0_i32_0 : i32, i32, i32
  }
  func.func @transform_9(%arg0: i32, %arg1: i32) -> (i32, i32, i32) {
    %c0_i32 = arith.constant 0 : i32
    %c0_i32_0 = arith.constant 0 : i32
    %c0_i32_1 = arith.constant 0 : i32
    return %arg0, %c0_i32, %c0_i32_0 : i32, i32, i32
  }
  func.func @transform_10(%arg0: i32, %arg1: i32) -> (i32, i32, i32) {
    %c0_i32 = arith.constant 0 : i32
    %c0_i32_0 = arith.constant 0 : i32
    %c0_i32_1 = arith.constant 0 : i32
    return %arg0, %c0_i32, %c0_i32_0 : i32, i32, i32
  }
}

</mosaic_0001>

<bundles_post_ra>
// kernel: vqvc_forward.1
= control target key start
LH: loop header
LB: loop body
LE: loop exit
PB: predicated region body
PF: predicated region fallthrough
CT: control target
= control target key end

     0   :  { %s2433_s0 = inlined_call_operand.vmem [shape: f32[2,16,128], index: 0, kind: input, shape index: {}]   ;;  %s2434_s1 = inlined_call_operand.vmem [shape: bf16[128,128], index: 1, kind: input, shape index: {}]   ;;  %s2435_s2 = inlined_call_operand.vmem [shape: bf16[128,128], index: 2, kind: input, shape index: {}]   ;;  %s2436_s3 = inlined_call_operand.vmem [shape: f32[1,128], index: 3, kind: input, shape index: {}]   ;;  %s2437_s4 = inlined_call_operand.vmem [shape: bf16[384,128], index: 4, kind: input, shape index: {}]   ;;  %s2438_s5 = inlined_call_operand.vmem [shape: f32[1,128], index: 5, kind: input, shape index: {}]   ;;  %s2439_s6 = inlined_call_operand.vmem [shape: bf16[384,80], index: 6, kind: input, shape index: {}]   ;;  %s2440_s7 = inlined_call_operand.vmem [shape: f32[1,80], index: 7, kind: input, shape index: {}]   ;;  %s2441_s8 = inlined_call_operand.hbm [shape: f32[2,16,80], index: 8, kind: output, shape index: {0}]   ;;  %s2442_s9 = inlined_call_operand.vmem [shape: f32[2,1,128], index: 9, kind: output, shape index: {1}]   ;;  %s2443_s10 = inlined_call_operand.vmem [shape: f32[2,1,128], index: 10, kind: output, shape index: {2}]  }
   0x1   :  { %2445 = sst [smem:[#allocation8_spill]] %s2442_s9 }
   0x2   :  { %16 = vsyncpa [#allocation5], 0 }
   0x3   :  { %18 = vsyncpa [#allocation5 + $0x1], 0  ;;  %s2001_s13 = smov 0   ;;  %s2003_s14 = smov 0  }
   0x4   :  { %s2005_s15 = smov 0   ;;  %s2007_s16 = smov 0  }
   0x5   :  { %s2009_s17 = smov 0   ;;  %s2011_s18 = smov 0  }
   0x6 LB: > { %s1476_s19 = sadd.s32 4294967295, %s1937_s18   ;;  %s1477_s20 = sadd.s32 4294967294, %s1937_s18   ;;  %s1937_s18 = sphi %s2011_s18, %s24_s18   ;;  %s1933_s17 = sphi %s2009_s17, %s2459_s17   ;;  %s1929_s16 = sphi %s2007_s16, %s2458_s16   ;;  %s1925_s15 = sphi %s2005_s15, %s2457_s15   ;;  %s1921_s14 = sphi %s2003_s14, %s2456_s14   ;;  %s1917_s13 = sphi %s2001_s13, %s2455_s13  }
   0x7   : > { %s36_s21 = sadd.s32 1, %s1933_s17  ;;  %s218_s22 = sadd.s32 1, %s1925_s15 }
   0x8   : > { %p38_p0 = scmp.ge.s32.totalorder %s36_s21, 2  ;;  %p228_p1 = scmp.ne.s32.totalorder %s1925_s15, %s1921_s14 }
   0x9   : > { %p229_p2 = scmp.eq.s32.totalorder %s1476_s19, 1  ;;  %p234_p3 = scmp.ne.s32.totalorder %s1921_s14, %s1917_s13 }
   0xa   : > { %s2461_s21 = smov (%p38_p0, %s36_s21), 0  ;;  %p235_p5 = scmp.eq.s32.totalorder %s1477_s20, 1 }
   0xb   : > { %2446 = sst [smem:[#allocation7_spill]] %s2461_s21  ;;  %p2041_p4 = por %p229_p2, %p228_p1 }
   0xc   : > { %s215_s24 = ssub.s32 %s1933_s17, %s2461_s21  ;;  %p1480_p6 = scmp.ge.s32.totalorder %s1937_s18, 1 }
   0xd   : > { %p216_p7 = scmp.eq.s32.totalorder %s215_s24, 0  ;;  %p2048_p8 = por %p235_p5, %p234_p3 }
   0xe   : > { %p339_p9 = scmp.lt.s32.totalorder %s1937_s18, 3 }
   0xf   : > { %s2054_s26 = scalar_select %p216_p7, %s1925_s15, %s218_s22  }
  0x10   : > { %p340_p10 = pnand %p1480_p6, %p339_p9 }
  0x11   : > { %v1795_v0 = vld [vmem:[%s2435_s2] sm:$0xff] (!%p340_p10)   ;;  %v1939_v1 = vmov (!%p340_p10), 0.0   ;;  %v1796_v2 = vld [vmem:[%s2435_s2 + $0x8] sm:$0xff] (!%p340_p10)   ;;  %vm1940_vm0 = vmmov (!%p340_p10), 0   ;;  %p388_p11 = scmp.lt.s32.totalorder (!%p340_p10), %s1929_s16, 1  ;;  %v1797_v3 = vld [vmem:[%s2435_s2 + $0x10] sm:$0xff] (!%p340_p10)   ;;  %v528_v19 = vlaneseq (!%p340_p10) }
  0x12   : > { %343 = sbr.rel (%p340_p10) target bundleno = 1423 (0x58f), region = 52  ;;  %1654 = vmatprep.subr.bf16.mxu0 (!%p340_p10), %v1939_v1  ;;  %410 = vst [vmem:[#allocation3] sm:$0x1] (!%p340_p10), %v1939_v1  ;;  %1674 = vmatprep.subr.bf16.mxu1 (!%p340_p10), %v1939_v1  ;;  %s2449_s9 = sld [smem:[#allocation8_spill]] (!%p340_p10)  ;;  %v1798_v4 = vld [vmem:[%s2435_s2 + $0x18] sm:$0xff] (!%p340_p10)   ;;  %v1799_v5 = vld [vmem:[%s2435_s2 + $0x20] sm:$0xff] (!%p340_p10)  }
  0x13   : > { %1655 = vmatpush3.bf16.msra.mxu0 (!%p340_p10), %v1795_v0  ;;  %1670 = vmatprep.mubr.msk.bf16.mxu0 (!%p340_p10), %vm1940_vm0, %v1939_v1  ;;  %v1800_v6 = vld [vmem:[%s2435_s2 + $0x28] sm:$0xff] (!%p340_p10)   ;;  %v1801_v7 = vld [vmem:[%s2435_s2 + $0x30] sm:$0xff] (!%p340_p10)   ;;  %v1802_v8 = vld [vmem:[%s2435_s2 + $0x38] sm:$0xff] (!%p340_p10)   ;;  %v2123_v20 = vand.u32 (!%p340_p10), 127, %v528_v19  ;;  %v1941_v58 = vmov (!%p340_p10), 1.0|1.0  }
  0x14   : > { %1656 = vmatprep.subr.bf16.mxu0 (!%p340_p10), %v1939_v1  ;;  %1690 = vmatprep.mubr.msk.bf16.mxu1 (!%p340_p10), %vm1940_vm0, %v1939_v1  ;;  %v1492_v12 = vld [vmem:[%s2436_s3] ss:$0 sm:$0xff] (!%p340_p10)  ;;  %v1804_v30 = vld [vmem:[%s2434_s1 + $0x8] sm:$0xff] (!%p340_p10)   ;;  %v1805_v31 = vld [vmem:[%s2434_s1 + $0x10] sm:$0xff] (!%p340_p10)   ;;  %vm1942_vm12 = vmmov (!%p340_p10), 1   ;;  %s1573_s28 = sshll.u32 (!%p340_p10), %s1929_s16, 8 }
  0x15   : > { %v1803_v29 = vld [vmem:[%s2434_s1] sm:$0xff] (!%p340_p10)   ;;  %v1806_v32 = vld [vmem:[%s2434_s1 + $0x18] sm:$0xff] (!%p340_p10)   ;;  %v1808_v34 = vld [vmem:[%s2434_s1 + $0x28] sm:$0xff] (!%p340_p10)   ;;  %vm1333_vm15 = vcmask (!%p340_p10), 654336   ;;  %s2383_s22 = scalar_lea.hbm (!%p340_p10), %s2441_s8, %s1573_s28  ;;  %s1943_s27 = smov (!%p340_p10), [#allocation4]  }
  0x16   : > { %1675 = vmatpush3.bf16.msra.mxu1 (!%p340_p10), %v1803_v29  ;;  %v1807_v33 = vld [vmem:[%s2434_s1 + $0x20] sm:$0xff] (!%p340_p10)   ;;  %v1809_v43 = vld [vmem:[%s2434_s1 + $0x30] sm:$0xff] (!%p340_p10)   ;;  %v1810_v44 = vld [vmem:[%s2434_s1 + $0x38] sm:$0xff] (!%p340_p10)  }
  0x17   : > { %1657 = vmatpush3.bf16.msra.mxu0 (!%p340_p10), %v1796_v2  ;;  %1676 = vmatprep.subr.bf16.mxu1 (!%p340_p10), %v1939_v1  ;;  %v1833_v29 = vld [vmem:[%s2437_s4 + $0x38] sm:$0xff] (!%p340_p10)  }
  0x18   : > { %1658 = vmatprep.subr.bf16.mxu0 (!%p340_p10), %v1939_v1 }
  0x19   : > { %s389_s11 = scalar_select %p388_p11, %s1929_s16, 1 }
  0x1a   : > { %1677 = vmatpush3.bf16.msra.mxu1 %v1804_v30  ;;  %v1834_v30 = vld [vmem:[%s2437_s4 + $0xb8] sm:$0xff]  }
  0x1b   : > { %s2078_s24 = scalar_lea.vmem %s2449_s9, %s389_s11  ;;  %s2084_s29 = scalar_lea.vmem %s2443_s10, %s389_s11  ;;  %1659 = vmatpush3.bf16.msra.mxu0 %v1797_v3  ;;  %1678 = vmatprep.subr.bf16.mxu1 %v1939_v1 }
  0x1c   : > { %408 = vst [vmem:[%s2078_s24] sm:$0x1] %v1939_v1  ;;  %s1572_s12 = sshll.u32 %s389_s11, 4  ;;  %409 = vst [vmem:[%s2084_s29] sm:$0x1] %v1939_v1  ;;  %1660 = vmatprep.subr.bf16.mxu0 %v1939_v1 }
  0x1d   : > { %s395_s9 = scalar_lea.vmem %s2433_s0, %s1572_s12 }
  0x1e   : > { %v2112_v9 = vld [vmem:[%s395_s9] sm:$0xff]  ;;  %v2114_v10 = vld [vmem:[%s395_s9 + $0x8] sm:$0xff]  ;;  %1679 = vmatpush3.bf16.msra.mxu1 %v1805_v31 }
  0x1f   : > { %1661 = vmatpush3.bf16.msra.mxu0 %v1798_v4  ;;  %v414_v11 = vpack.c.bf16 %v2114_v10, %v2112_v9  ;;  %1680 = vmatprep.subr.bf16.mxu1 %v1939_v1  ;;  %v1811_v4 = vld [vmem:[%s2437_s4 + $0x40] sm:$0xff]  }
  0x20   : > { %1662 = vmatprep.subr.bf16.mxu0 %v1939_v1  ;;  %v1835_v31 = vld [vmem:[%s2439_s6 + $0x40] sm:$0xff]  }
  0x22   : > { %1681 = vmatpush3.bf16.msra.mxu1 %v1806_v32 }
  0x23   : > { %1663 = vmatpush3.bf16.msra.mxu0 %v1799_v5  ;;  %1682 = vmatprep.subr.bf16.mxu1 %v1939_v1  ;;  %v704_v0 = vld [vmem:[%s2084_s29] sm:$0x1] }
  0x24   : > { %1664 = vmatprep.subr.bf16.mxu0 %v1939_v1  ;;  %v1812_v5 = vld [vmem:[%s2437_s4] sm:$0xff]  }
  0x26   : > { %1683 = vmatpush3.bf16.msra.mxu1 %v1807_v33 }
  0x27   : > { %1665 = vmatpush3.bf16.msra.mxu0 %v1800_v6  ;;  %1684 = vmatprep.subr.bf16.mxu1 %v1939_v1  ;;  %v1813_v6 = vld [vmem:[%s2437_s4 + $0x80] sm:$0xff]  }
  0x28   : > { %1666 = vmatprep.subr.bf16.mxu0 %v1939_v1 }
  0x2a   : > { %1685 = vmatpush3.bf16.msra.mxu1 %v1808_v34 }
  0x2b   : > { %1667 = vmatpush3.bf16.msra.mxu0 %v1801_v7  ;;  %1686 = vmatprep.subr.bf16.mxu1 %v1939_v1  ;;  %v1814_v7 = vld [vmem:[%s2437_s4 + $0x48] sm:$0xff]  }
  0x2c   : > { %1668 = vmatprep.subr.bf16.mxu0 %v1939_v1 }
  0x2e   : > { %1687 = vmatpush3.bf16.msra.mxu1 %v1809_v43 }
  0x2f   : > { %1669 = vmatpush3.bf16.msra.mxu0 %v1802_v8  ;;  %1688 = vmatprep.subr.bf16.mxu1 %v1939_v1  ;;  %v1815_v8 = vld [vmem:[%s2437_s4 + $0x8] sm:$0xff]  }
  0x30   : > { %1592 = vmatprep.subr.bf16.mxu0 %v1811_v4 }
  0x32   : > { %1671 = vmatmul.mubr.bf16.vlgmr.msra.gmra.mrb[0].mxu0 %v414_v11  ;;  %1689 = vmatpush3.bf16.msra.mxu1 %v1810_v44  ;;  %v1816_v11 = vld [vmem:[%s2437_s4 + $0x88] sm:$0xff]  }
  0x33   : > { %1694 = vmatprep.subr.bf16.mxu1 %v1939_v1  ;;  %1593 = vmatpush3.bf16.msra.mxu0 %v1812_v5 }
  0x34   : > { %1594 = vmatprep.subr.bf16.mxu0 %v1814_v7 }
  0x37   : > { %1595 = vmatpush3.bf16.msra.mxu0 %v1815_v8 }
 0x105   : > { %v513_v13 = vpop.f32.mrb[0].mxu0 }
 0x106   : > { %v526_v14 = vadd.f32 %v1492_v12, %v513_v13  ;;  %v1672_v15 = vpop.f32.mrb[1].mxu0  ;;  %v1818_v13 = vld [vmem:[%s2437_s4 + $0x10] sm:$0xff]  }
 0x107   : > { %v516_v16 = vpop.f32.mrb[2].mxu0  ;;  %v1820_v15 = vld [vmem:[%s2437_s4 + $0x58] sm:$0xff]  }
 0x108   : > { %530 = vmin.xlane.f32.xlu0 %v526_v14  ;;  %v1673_v17 = vpop.f32.mrb[3].mxu0  ;;  %v527_v18 = vadd.f32 %v1492_v12, %v516_v16  ;;  %v1817_v12 = vld [vmem:[%s2437_s4 + $0x50] sm:$0xff]   ;;  %v1821_v16 = vld [vmem:[%s2437_s4 + $0x18] sm:$0xff]  }
 0x109   : > { %1596 = vmatprep.subr.bf16.mxu0 %v1817_v12  ;;  %v1822_v17 = vld [vmem:[%s2437_s4 + $0x98] sm:$0xff]  }
 0x10a   : > { %1597 = vmatpush3.bf16.msra.mxu0 %v1818_v13 }
 0x10b   : > { %1598 = vmatprep.subr.bf16.mxu0 %v1820_v15 }
 0x10c   : > { %532 = vmin.xlane.f32.xlu0 %v527_v18 }
 0x10e   : > { %1599 = vmatpush3.bf16.msra.mxu0 %v1821_v16  ;;  %v1836_v16 = vld [vmem:[%s2439_s6] sm:$0xff]  }
 0x195   : > { %v531_v21 = vpop.xlane.xlu0 %530 }
 0x196   : > { %vm534_vm1 = vcmp.le.f32.partialorder %v526_v14, %v531_v21  ;;  %v1819_v14 = vld [vmem:[%s2437_s4 + $0x90] sm:$0xff]   ;;  %v1825_v21 = vld [vmem:[%s2437_s4 + $0xa0] sm:$0xff]  }
 0x197   : > { %v536_v22 = vsel %vm534_vm1, %v2123_v20, 128 }
 0x198   : > { %v539_v23 = vshra.s32 %v536_v22, 16  ;;  %v538_v35 = vand.u32 65535, %v536_v22  ;;  %v1826_v22 = vld [vmem:[%s2437_s4 + $0x68] sm:$0xff]  }
 0x199   : > { %v533_v24 = vpop.xlane.xlu0 %532 }
 0x19a   : > { %vm535_vm2 = vcmp.le.f32.partialorder %v527_v18, %v533_v24  ;;  %v541_v25 = vcvt.s32.f32 %v539_v23  ;;  %v540_v38 = vcvt.s32.f32 %v538_v35  ;;  %v1823_v18 = vld [vmem:[%s2437_s4 + $0x60] sm:$0xff]   ;;  %v1827_v23 = vld [vmem:[%s2437_s4 + $0x28] sm:$0xff]  }
 0x19b   : > { %v537_v26 = vsel %vm535_vm2, %v2123_v20, 128  ;;  %1600 = vmatprep.subr.bf16.mxu0 %v1823_v18  ;;  %v1828_v24 = vld [vmem:[%s2437_s4 + $0xa8] sm:$0xff]  }
 0x19c   : > { %542 = vmin.xlane.f32.xlu1 %v541_v25  ;;  %v553_v27 = vshra.s32 %v537_v26, 16  ;;  %v552_v36 = vand.u32 65535, %v537_v26  ;;  %v1830_v26 = vld [vmem:[%s2437_s4 + $0x30] sm:$0xff]  }
 0x19e   : > { %v555_v28 = vcvt.s32.f32 %v553_v27  ;;  %v554_v41 = vcvt.s32.f32 %v552_v36  ;;  %v1831_v27 = vld [vmem:[%s2437_s4 + $0xb0] sm:$0xff]  }
 0x1a0   : > { %556 = vmin.xlane.f32.xlu1 %v555_v28 }
 0x229   : > { %v543_v37 = vpop.xlane.xlu1 %542 }
 0x22a   : > { %vm544_vm3 = vcmp.eq.f32.partialorder %v541_v25, %v543_v37  ;;  %v549_v45 = vcvt.f32.s32 %v543_v37  ;;  %v1829_v25 = vld [vmem:[%s2437_s4 + $0x70] sm:$0xff]  }
 0x22b   : > { %v545_v39 = vsel %vm544_vm3, %v540_v38, inf }
 0x22c   : > { %546 = vmin.xlane.f32.xlu0 %v545_v39  ;;  %v550_v47 = vshll.u32 %v549_v45, 16 }
 0x22d   : > { %v557_v40 = vpop.xlane.xlu1 %556 }
 0x22e   : > { %vm558_vm4 = vcmp.eq.f32.partialorder %v555_v28, %v557_v40  ;;  %v563_v48 = vcvt.f32.s32 %v557_v40  ;;  %v1832_v28 = vld [vmem:[%s2437_s4 + $0x78] sm:$0xff]  }
 0x22f   : > { %v559_v42 = vsel %vm558_vm4, %v554_v41, inf }
 0x230   : > { %560 = vmin.xlane.f32.xlu1 %v559_v42  ;;  %v564_v52 = vshll.u32 %v563_v48, 16 }
 0x2b9   : > { %v547_v46 = vpop.xlane.xlu0 %546 }
 0x2ba   : > { %v548_v49 = vcvt.f32.s32 %v547_v46 }
 0x2bc   : > { %v551_v50 = vadd.s32 %v550_v47, %v548_v49 }
 0x2bd   : > { %v561_v51 = vpop.xlane.xlu1 %560 }
 0x2be   : > { %v562_v53 = vcvt.f32.s32 %v561_v51  ;;  %vm566_vm5 = vcmp.eq.s32.totalorder %v2123_v20, %v551_v50  ;;  %v682_v51 = vld [vmem:[#allocation3] sm:$0x1] }
 0x2bf   : > { %v1493_v55 = vsel %vm566_vm5, 1.0, %v1939_v1 }
 0x2c0   : > { %v565_v54 = vadd.s32 %v564_v52, %v562_v53  ;;  %v692_v53 = vld [vmem:[%s2078_s24] sm:$0x1] }
 0x2c2   : > { %vm567_vm6 = vcmp.eq.s32.totalorder %v2123_v20, %v565_v54  ;;  %v1824_v20 = vld [vmem:[%s2437_s4 + $0x20] sm:$0xff]  }
 0x2c3   : > { %v1494_v56 = vsel %vm567_vm6, 1.0, %v1939_v1  ;;  %vm1503_vm7 = vmpackc.low %vm567_vm6, %vm566_vm5  ;;  %1601 = vmatpush3.bf16.msra.mxu0 %v1824_v20 }
 0x2c4   : > { %v705_v57 = vadd.f32 %v1494_v56, %v1493_v55  ;;  %1691 = vmatmul.mubr.msk.bf16.vlgmr.msra.gmra.mrb[0].mxu1 %vm1503_vm7, %v1941_v58  ;;  %1602 = vmatprep.subr.bf16.mxu0 %v1826_v22  ;;  %v1839_v22 = vld [vmem:[%s2439_s6 + $0x8] sm:$0xff]  }
 0x2c5   : > { %1710 = vmatprep.mubr.msk.bf16.mxu1 %vm1940_vm0, %v1939_v1  ;;  %1695 = vmatpush3.bf16.msra.mxu1 %v1813_v6 }
 0x2c6   : > { %v706_v59 = vrot.slane %v705_v57, 4  ;;  %1696 = vmatprep.subr.bf16.mxu1 %v1939_v1 }
 0x2c7   : > { %1603 = vmatpush3.bf16.msra.mxu0 %v1827_v23  ;;  %v1840_v23 = vld [vmem:[%s2439_s6 + $0x88] sm:$0xff]  }
 0x2c8   : > { %v707_v60 = vadd.f32 %v706_v59, %v705_v57  ;;  %1604 = vmatprep.subr.bf16.mxu0 %v1829_v25  ;;  %v2254_v57 = vshrl.u32 %v528_v19, 7  ;;  %v1842_v25 = vld [vmem:[%s2439_s6 + $0x10] sm:$0xff]  }
 0x2c9   : > { %1697 = vmatpush3.bf16.msra.mxu1 %v1816_v11 }
 0x2ca   : > { %v708_v61 = vrot.slane %v707_v60, 2  ;;  %1698 = vmatprep.subr.bf16.mxu1 %v1939_v1  ;;  %v725_v58 = vsub.s32 0, %v2254_v57  ;;  %vm733_vm8 = vcmp.ge.s32.totalorder %v2254_v57, 1  ;;  %vm737_vm9 = vcmp.lt.s32.totalorder %v2254_v57, 1 }
 0x2cb   : > { %1605 = vmatpush3.bf16.msra.mxu0 %v1830_v26  ;;  %vm746_vm11 = vcmp.lt.s32.totalorder %v2254_v57, 7  ;;  %vm2262_vm13 = vmpackc.low %vm1942_vm12, %vm733_vm8  ;;  %v1843_v26 = vld [vmem:[%s2439_s6 + $0x90] sm:$0xff]  }
 0x2cc   : > { %v709_v62 = vadd.f32 %v708_v61, %v707_v60  ;;  %1606 = vmatprep.subr.bf16.mxu0 %v1832_v28  ;;  %v732_v61 = vadd.s32 8, %v2254_v57  ;;  %v1845_v28 = vld [vmem:[%s2439_s6 + $0x18] sm:$0xff]  }
 0x2cd   : > { %1699 = vmatpush3.bf16.msra.mxu1 %v1819_v14 }
 0x2ce   : > { %v710_v63 = vrot.slane %v709_v62, 1  ;;  %1700 = vmatprep.subr.bf16.mxu1 %v1939_v1  ;;  %vm743_vm10 = vcmp.le.s32.totalorder %v732_v61, 14 }
 0x2cf   : > { %1607 = vmatpush3.bf16.msra.mxu0 %v1833_v29  ;;  %vm2274_vm14 = vmpackc.low %vm743_vm10, %vm1942_vm12  ;;  %v1846_v29 = vld [vmem:[%s2439_s6 + $0x98] sm:$0xff]  }
 0x2d0   : > { %v711_v2 = vadd.f32 %v710_v63, %v709_v62  ;;  %1623 = vmatprep.subr.bf16.mxu0 %v1835_v31  ;;  %v1848_v31 = vld [vmem:[%s2439_s6 + $0x20] sm:$0xff]  }
 0x2d1   : > { %1701 = vmatpush3.bf16.msra.mxu1 %v1822_v17  ;;  %v1837_v17 = vld [vmem:[%s2439_s6 + $0x80] sm:$0xff]  }
 0x2d2   : > { %v712_v3 = vadd.f32 %v711_v2, %v704_v0  ;;  %1702 = vmatprep.subr.bf16.mxu1 %v1939_v1 }
 0x2d4   : > { %713 = vst [vmem:[%s2084_s29] sm:$0x1] %v712_v3 }
 0x2d5   : > { %1703 = vmatpush3.bf16.msra.mxu1 %v1825_v21  ;;  %v1838_v21 = vld [vmem:[%s2439_s6 + $0x48] sm:$0xff]  }
 0x2d6   : > { %1704 = vmatprep.subr.bf16.mxu1 %v1939_v1 }
 0x2d9   : > { %1705 = vmatpush3.bf16.msra.mxu1 %v1828_v24  ;;  %v1841_v24 = vld [vmem:[%s2439_s6 + $0x50] sm:$0xff]  }
 0x2da   : > { %1706 = vmatprep.subr.bf16.mxu1 %v1939_v1 }
 0x2dd   : > { %1707 = vmatpush3.bf16.msra.mxu1 %v1831_v27  ;;  %v1844_v27 = vld [vmem:[%s2439_s6 + $0x58] sm:$0xff]  }
 0x2de   : > { %1708 = vmatprep.subr.bf16.mxu1 %v1939_v1 }
 0x2e1   : > { %1709 = vmatpush3.bf16.msra.mxu1 %v1834_v30  ;;  %v1847_v30 = vld [vmem:[%s2439_s6 + $0x60] sm:$0xff]  }
 0x2e2   : > { %1714 = vmatprep.subr.bf16.mxu1 %v1939_v1 }
 0x397   : > { %v671_v32 = vpop.f32.mrb[0].mxu1 }
 0x398   : > { %v678_v33 = vsub.f32 %v2112_v9, %v671_v32  ;;  %v1692_v34 = vpop.f32.mrb[1].mxu1 }
 0x399   : > { %v674_v35 = vpop.f32.mrb[2].mxu1  ;;  %v1851_v34 = vld [vmem:[%s2439_s6 + $0x28] sm:$0xff]  }
 0x39a   : > { %v679_v36 = vsub.f32 %v2114_v10, %v674_v35  ;;  %v680_v37 = vpack.c.bf16 %v674_v35, %v671_v32  ;;  %v1693_v38 = vpop.f32.mrb[3].mxu1  ;;  %v693_v39 = vmul.f32 %v678_v33, %v678_v33  ;;  %v1849_v32 = vld [vmem:[%s2439_s6 + $0xa0] sm:$0xff]   ;;  %v1852_v35 = vld [vmem:[%s2439_s6 + $0xa8] sm:$0xff]  }
 0x39b   : > { %v1855_v38 = vld [vmem:[%s2439_s6 + $0xb0] sm:$0xff]  }
 0x39c   : > { %v683_v40 = vadd.f32 %v679_v36, %v678_v33  ;;  %v694_v41 = vmul.f32 %v679_v36, %v679_v36  ;;  %v720_v62 = vunpack.c.l.bf16 %v680_v37  ;;  %v721_v63 = vunpack.c.h.bf16 %v680_v37  ;;  %v1850_v33 = vld [vmem:[%s2439_s6 + $0x68] sm:$0xff]   ;;  %v1853_v36 = vld [vmem:[%s2439_s6 + $0x70] sm:$0xff]  }
 0x39d   : > { %v1854_v37 = vld [vmem:[%s2439_s6 + $0x30] sm:$0xff]  }
 0x39e   : > { %v684_v42 = vrot.slane %v683_v40, 4  ;;  %v695_v43 = vadd.f32 %v694_v41, %v693_v39  ;;  %v1856_v39 = vld [vmem:[%s2439_s6 + $0x78] sm:$0xff]  }
 0x39f   : > { %v1858_v41 = vld [vmem:[%s2439_s6 + $0xb8] sm:$0xff]  }
 0x3a0   : > { %v685_v44 = vadd.f32 %v684_v42, %v683_v40  ;;  %v696_v45 = vrot.slane %v695_v43, 4  ;;  %v1857_v40 = vld [vmem:[%s2439_s6 + $0x38] sm:$0xff]  }
 0x3a2   : > { %v686_v46 = vrot.slane %v685_v44, 2  ;;  %v697_v47 = vadd.f32 %v696_v45, %v695_v43 }
 0x3a4   : > { %v687_v48 = vadd.f32 %v686_v46, %v685_v44  ;;  %v698_v49 = vrot.slane %v697_v47, 2  ;;  %v1505_v44 = vld [vmem:[%s2438_s5] ss:$0 sm:$0xff] }
 0x3a6   : > { %v688_v9 = vrot.slane %v687_v48, 1  ;;  %v699_v50 = vadd.f32 %v698_v49, %v697_v47 }
 0x3a8   : > { %v689_v52 = vadd.f32 %v688_v9, %v687_v48  ;;  %v700_v10 = vrot.slane %v699_v50, 1 }
 0x3aa   : > { %v690_v54 = vadd.f32 %v689_v52, %v682_v51  ;;  %v701_v55 = vadd.f32 %v700_v10, %v699_v50 }
 0x3ac   : > { %691 = vst [vmem:[#allocation3] sm:$0x1] %v690_v54  ;;  %v702_v56 = vadd.f32 %v701_v55, %v692_v53 }
 0x3ae   : > { %703 = vst [vmem:[%s2078_s24] sm:$0x1] %v702_v56  ;;  %s374_s24 = sand.u32 1, %s1921_s14  }
 0x3af   : > { %s1481_s21 = sshll.u32 %s374_s24, 4  ;;  %s2387_s9 = scalar_lea.sflag [#allocation5], %s374_s24 }
 0x3b0   : > { %s376_s30 = scalar_lea.vmem [#allocation4], %s1481_s21  ;;  %s1863_s21 = sshll.u32 %s1943_s27, 4  ;;  %s1864_s21 = int_to_ptr.vmem [resolvable:$false] %s1863_s21 }
 0x3b1   : > { %s1356_s19 = sshll.u32 %s376_s30, 4  ;;  %s1865_s11 = scalar_lea.vmem %s1864_s21, 512  ;;  %s2385_s19 = int_to_ptr.vmem [resolvable:$true] %s1356_s19 }
 0x3b2   : > { %s1859_s16 = scalar_lea.vmem %s2385_s19, 256  ;;  %p1866_p1 = scmp.lt.s32.totalorder %s2385_s19, %s1864_s21 }
 0x3b3   : > { %v717_v59 = vld [vmem:[#allocation3] sm:$0x1]  ;;  %p1860_p12 = scmp.ne.s32.totalorder %s2385_s19, %s1859_s16  ;;  %p1867_p2 = scmp.lt.s32.totalorder %s1865_s11, %s1859_s16 }
 0x3b4   : > { %v718_v60 = vmul.f32 0.0625, %v717_v59 }
 0x3b5   : > { %p1861_p13 = pnand %p1860_p12, %p2041_p4  ;;  %p1868_p3 = por %p1867_p2, %p1866_p1 }
 0x3b6   : > { %v726_v0 = vrot.slane %v718_v60, %v725_v58 }
 0x3b7   : > { %p1862_p0 = pneg %p1861_p13 }
 0x3b8   : > { %v728_v2 = vadd.f32 %v726_v0, %v720_v62  ;;  %v729_v3 = vadd.f32 %v726_v0, %v721_v63 }
 0x3b9   : > { %p1869_p5 = pnand %p1868_p3, %p1862_p0 }
 0x3ba   : > { %v735_v19 = vrot.slane %v728_v2, 7  ;;  %v736_v4 = vrot.slane %v729_v3, 7  ;;  %v744_v5 = vrot.slane %v728_v2, 1  ;;  %v745_v6 = vrot.slane %v729_v3, 1 }
 0x3bb   : > { %v752_v7 = vpack.c.bf16 %v729_v3, %v728_v2 }
 0x3bc   : > { %v738_v11 = vsel %vm737_vm9, %v735_v19, %v736_v4  ;;  %v739_v12 = vsel %vm737_vm9, %v736_v4, %v735_v19  ;;  %v747_v13 = vsel %vm746_vm11, %v744_v5, %v745_v6  ;;  %v748_v14 = vsel %vm746_vm11, %v745_v6, %v744_v5  ;;  %v1536_v6 = vld [vmem:[%s2440_s7] ss:$0 sm:$0xff] }
 0x3bd   : > { %985 = vmatprep.mubr.bf16.mxu0 %v752_v7  ;;  %v1531_v18 = vpack.c.bf16 %v738_v11, %v739_v12  ;;  %v1534_v20 = vpack.c.bf16 %v748_v14, %v747_v13 }
 0x3bf   : > { %1532 = vmatmul.mubr.msk.bf16.vlgmr.msra.gmra.mrb[4].mxu0 %vm2262_vm13, %v1531_v18  ;;  %1711 = vmatmul.mubr.msk.bf16.vlgmr.msra.gmra.mrb[4].mxu1 %vm2274_vm14, %v1534_v20 }
 0x3c0   : > { %1624 = vmatpush3.bf16.msra.mxu0 %v1836_v16  ;;  %1715 = vmatpush3.bf16.msra.mxu1 %v1837_v17 }
 0x3c1   : > { %1625 = vmatprep.subr.bf16.mxu0 %v1838_v21  ;;  %1716 = vmatprep.subr.bf16.mxu1 %v1939_v1 }
 0x3c2   : > { %1730 = vmatprep.mubr.msk.bf16.mxu1 %vm1940_vm0, %v1939_v1 }
 0x3c4   : > { %1626 = vmatpush3.bf16.msra.mxu0 %v1839_v22  ;;  %1717 = vmatpush3.bf16.msra.mxu1 %v1840_v23 }
 0x3c5   : > { %1627 = vmatprep.subr.bf16.mxu0 %v1841_v24  ;;  %1718 = vmatprep.subr.bf16.mxu1 %v1939_v1 }
 0x3c8   : > { %1628 = vmatpush3.bf16.msra.mxu0 %v1842_v25  ;;  %1719 = vmatpush3.bf16.msra.mxu1 %v1843_v26 }
 0x3c9   : > { %1629 = vmatprep.subr.bf16.mxu0 %v1844_v27  ;;  %1720 = vmatprep.subr.bf16.mxu1 %v1939_v1 }
 0x3cc   : > { %1630 = vmatpush3.bf16.msra.mxu0 %v1845_v28  ;;  %1721 = vmatpush3.bf16.msra.mxu1 %v1846_v29 }
 0x3cd   : > { %1722 = vmatprep.subr.bf16.mxu1 %v1939_v1  ;;  %1631 = vmatprep.subr.bf16.mxu0 %v1847_v30 }
 0x3d0   : > { %1632 = vmatpush3.bf16.msra.mxu0 %v1848_v31  ;;  %1723 = vmatpush3.bf16.msra.mxu1 %v1849_v32 }
 0x3d1   : > { %1724 = vmatprep.subr.bf16.mxu1 %v1939_v1  ;;  %1633 = vmatprep.subr.bf16.mxu0 %v1850_v33 }
 0x3d4   : > { %1634 = vmatpush3.bf16.msra.mxu0 %v1851_v34  ;;  %1725 = vmatpush3.bf16.msra.mxu1 %v1852_v35 }
 0x3d5   : > { %1726 = vmatprep.subr.bf16.mxu1 %v1939_v1  ;;  %1635 = vmatprep.subr.bf16.mxu0 %v1853_v36 }
 0x3d8   : > { %1636 = vmatpush3.bf16.msra.mxu0 %v1854_v37  ;;  %1727 = vmatpush3.bf16.msra.mxu1 %v1855_v38 }
 0x3d9   : > { %1728 = vmatprep.subr.bf16.mxu1 %v1939_v1  ;;  %1637 = vmatprep.subr.bf16.mxu0 %v1856_v39 }
 0x3dc   : > { %1638 = vmatpush3.bf16.msra.mxu0 %v1857_v40  ;;  %1729 = vmatpush3.bf16.msra.mxu1 %v1858_v41 }
 0x492   : > { %v1608_v42 = vpop.f32.mrb[4].mxu0  ;;  %v1028_v43 = vpop.f32.mrb[4].mxu1 }
 0x493   : > { %v1609_v45 = vpop.f32.mrb[5].mxu0  ;;  %v1712_v46 = vpop.f32.mrb[5].mxu1 }
 0x494   : > { %v1610_v1 = vadd.f32 %v1609_v45, %v1608_v42  ;;  %v1611_v47 = vpop.f32.mrb[6].mxu0  ;;  %v1031_v48 = vpop.f32.mrb[6].mxu1 }
 0x495   : > { %v1612_v49 = vpop.f32.mrb[7].mxu0  ;;  %v1713_v9 = vpop.f32.mrb[7].mxu1 }
 0x496   : > { %v988_v50 = vadd.f32 %v1610_v1, %v1505_v44  ;;  %v1613_v51 = vadd.f32 %v1612_v49, %v1611_v47 }
 0x498   : > { %v1029_v52 = vadd.f32 %v1028_v43, %v988_v50  ;;  %v991_v10 = vadd.f32 %v1613_v51, %v1505_v44 }
 0x49a   : > { %v1035_v53 = vmax.f32 %v1029_v52, 0.0  ;;  %v1032_v54 = vadd.f32 %v1031_v48, %v991_v10 }
 0x49c   : > { %v1036_v55 = vmax.f32 %v1032_v54, 0.0  ;;  %v1037_v56 = vrot.slane %v1035_v53, 7  ;;  %v1043_v58 = vrot.slane %v1035_v53, 1 }
 0x49e   : > { %v1038_v59 = vrot.slane %v1036_v55, 7  ;;  %v1044_v60 = vrot.slane %v1036_v55, 1  ;;  %v1050_v61 = vpack.c.bf16 %v1036_v55, %v1035_v53 }
 0x4a0   : > { %1283 = vmatprep.mubr.bf16.mxu0 %v1050_v61  ;;  %v1039_v62 = vsel %vm737_vm9, %v1037_v56, %v1038_v59  ;;  %v1040_v63 = vsel %vm737_vm9, %v1038_v59, %v1037_v56  ;;  %v1045_v0 = vsel %vm746_vm11, %v1043_v58, %v1044_v60  ;;  %v1046_v2 = vsel %vm746_vm11, %v1044_v60, %v1043_v58 }
 0x4a1   : > { %v1562_v3 = vpack.c.bf16 %v1039_v62, %v1040_v63  ;;  %v1565_v19 = vpack.c.bf16 %v1046_v2, %v1045_v0 }
 0x4a3   : > { %1563 = vmatmul.mubr.msk.bf16.vlgmr.msra.gmra.mrb[8].mxu0 %vm2262_vm13, %v1562_v3  ;;  %1731 = vmatmul.mubr.msk.bf16.vlgmr.msra.gmra.mrb[8].mxu1 %vm2274_vm14, %v1565_v19 }
 0x576   : > { %v1639_v4 = vpop.f32.mrb[8].mxu0  ;;  %v1326_v5 = vpop.f32.mrb[8].mxu1 }
 0x577   : > { %v1640_v7 = vpop.f32.mrb[9].mxu0  ;;  %v1732_v57 = vpop.f32.mrb[9].mxu1 }
 0x578   : > { %v1641_v11 = vadd.f32 %v1640_v7, %v1639_v4  ;;  %v1642_v12 = vpop.f32.mrb[10].mxu0  ;;  %v1329_v13 = vpop.f32.mrb[10].mxu1 }
 0x579   : > { %v1643_v14 = vpop.f32.mrb[11].mxu0  ;;  %v1733_v8 = vpop.f32.mrb[11].mxu1 }
 0x57a   : > { %v1286_v16 = vadd.f32 %v1641_v11, %v1536_v6  ;;  %v1644_v15 = vadd.f32 %v1643_v14, %v1642_v12 }
 0x57c   : > { %v1327_v17 = vadd.f32 %v1326_v5, %v1286_v16  ;;  %v1289_v18 = vadd.f32 %v1644_v15, %v1536_v6 }
 0x57e   : > { %1334 = vst.msk [vmem:[%s376_s30] sm:$0xff] %vm1333_vm15, %v1327_v17  ;;  %v1330_v20 = vadd.f32 %v1329_v13, %v1289_v18 }
 0x580   : > { %1335 = vst.msk [vmem:[%s376_s30 + $0x8] sm:$0xff] %vm1333_vm15, %v1330_v20 }
 0x581   : > { %1872 = shalt.err (!%p1869_p5)
}
 0x582   : > { %s1873_s24 = scalar_lea.hbm %s2383_s22, 256  ;;  %s1877_s30 = scalar_lea.hbm %s2441_s8, 512 }
 0x583   : > { %p1874_p6 = scmp.ne.s32.totalorder %s2383_s22, %s1873_s24  ;;  %p1878_p10 = scmp.lt.u32.totalorder %s2383_s22, %s2441_s8 }
 0x584   : > { %p1879_p11 = scmp.lt.u32.totalorder %s1877_s30, %s1873_s24  ;;  %p1881_p13 = scmp.lt.u32.totalorder %s1873_s24, %s2383_s22 }
 0x585   : > { %p1875_p7 = pnand %p1874_p6, %p2041_p4 }
 0x586   : > { %p1880_p12 = por %p1879_p11, %p1878_p10 }
 0x587   : > { %p1876_p9 = pneg %p1875_p7 }
 0x588   : > { %p1882_p0 = por %p1881_p13, %p1880_p12 }
 0x58a   : > { %p1883_p1 = pnand %p1882_p0, %p1876_p9 }
 0x58c   : > { %1886 = shalt.err (!%p1883_p1)
}
 0x58d   : > { %s1944_s16 = smov 128   ;;  %s1945_s27 = smov 8  }
 0x58e   : > { %1734 = dma.vmem_to_hbm [thread:$0]  (%p2041_p4), %s2385_s19, 256, %s2383_s22, %s2387_s9, %s1944_s16, %s1944_s16, %s1945_s27  }
 0x58f PF: > { %p1740_p2 = scmp.ge.s32.totalorder %s1937_s18, 2  ;;  %s1377_s21 = sand.u32 1, %s1917_s13  }
 0x590   : > { %s1378_s11 = scalar_lea.sflag [#allocation5], %s1377_s21 }
 0x591   : > { %p1737_p3 = pnand %p1740_p2, %p2048_p8 }
 0x593   : > { %1912 = dma.done.wait (!%p1737_p3), %s1378_s11, 256  }
 0x594   : > { %1914 = vsyncadd (!%p1737_p3), %s1378_s11, 4294967040  ;;  %s24_s18 = sadd.s32 1, %s1937_s18   ;;  %s2454_s23 = sld [smem:[#allocation7_spill]] }
 0x595   : > { %p21_p5 = scmp.ge.s32.totalorder %s24_s18, 4   ;;  %s2455_s13 = smov %s1921_s14 }
 0x596   : > { %s2456_s14 = smov %s1925_s15  ;;  %s2457_s15 = smov %s2054_s26 }
 0x597   : > { %s2458_s16 = smov %s1933_s17  ;;  %23 = sbr.rel (!%p21_p5) target bundleno = 6 (0x6), region = 119 }
 0x59a   : > { %s2459_s17 = smov %s2454_s23 }
 0x59e   :  { %1395 = vsyncpa [#allocation5], 1 }
 0x59f   :  { %1397 = vsyncpa [#allocation5 + $0x1], 1 }

</bundles_post_ra>
